<compile_context>
chip_gen: v7x
topology: tpu7x:2x2x1
jax: 0.10.0
libtpu: 0.0.40
codegen_flags: <defaults>
</compile_context>

<pallas_src>
import jax
import jax.numpy as jnp
from jax.experimental import pallas as pl
from jax.experimental.pallas import tpu as pltpu


def _round_up(n, m):
    return ((n + m - 1) // m) * m


def _linear_kernel(x_ref, wt_ref, b_ref, o_ref):
    # x_ref: (TB, D), wt_ref: (D, A), b_ref: (1, A) f32, o_ref: (TB, A)
    acc = jnp.dot(x_ref[...], wt_ref[...], preferred_element_type=jnp.float32)
    o_ref[...] = (acc + b_ref[...]).astype(o_ref.dtype)


def prepare_policy_net_params(weight, bias, compute_dtype=jnp.float32):
    """One-time parameter layout: (A, D) torch weight -> (D, A); bias -> (1, A) f32.

    Call this ONCE at parameter-init time (not per forward) so the transpose /
    cast never appears on the per-step path.
    """
    wt = jnp.asarray(weight).T.astype(compute_dtype)           # (D, A)
    b2 = jnp.asarray(bias).reshape(1, -1).astype(jnp.float32)  # (1, A)
    return wt, b2


def policy_net_forward(x, wt, b2, *, tb=4096, min_pallas_batch=256):
    """PolicyNet.forward: logits = x @ W^T + b, returned in float32.

    x:  (B, D)
    wt: (D, A)  pre-transposed weight from prepare_policy_net_params
    b2: (1, A)  f32 bias from prepare_policy_net_params
    """
    B, D = x.shape
    D2, A = wt.shape
    assert D == D2, "feature dims must match"

    compute_dtype = wt.dtype
    xc = x.astype(compute_dtype)

    # Small-batch bypass: at typical A2C rollout widths the fixed pallas_call
    # + DMA latency exceeds the work; let XLA's fused emitter handle it.
    if B < min_pallas_batch:
        return jnp.dot(xc, wt, preferred_element_type=jnp.float32) + b2

    # Batch tile: sublane-aligned, capped at tb rows.
    TB = min(_round_up(tb, 8), _round_up(B, 8))
    grid = (pl.cdiv(B, TB),)  # ragged final block handled by block clamping

    return pl.pallas_call(
        _linear_kernel,
        out_shape=jax.ShapeDtypeStruct((B, A), jnp.float32),
        grid=grid,
        in_specs=[
            pl.BlockSpec((TB, D), lambda i: (i, 0)),   # x: walks the batch
            pl.BlockSpec((D, A), lambda i: (0, 0)),    # W^T: resident in VMEM
            pl.BlockSpec((1, A), lambda i: (0, 0)),    # bias: resident in VMEM
        ],
        # Compact (TB, A) output block: last dim equals the full array dim, so
        # stores are masked vst but HBM writeback bytes drop 16x vs. A_pad=128.
        out_specs=pl.BlockSpec((TB, A), lambda i: (i, 0)),
        compiler_params=pltpu.CompilerParams(
            dimension_semantics=("parallel",),
        ),
    )(xc, wt, b2)


if __name__ == "__main__":
    # Small shapes consistent with the module: input_size=32 features, 8 actions.
    batch = 4
    input_size = 32
    actions_n = 8

    key = jax.random.PRNGKey(0)
    kx, kw, kb = jax.random.split(key, 3)

    # Deterministic parameter init (mimics nn.Linear's uniform(-1/sqrt(D), 1/sqrt(D))).
    bound = 1.0 / (input_size ** 0.5)
    weight = jax.random.uniform(
        kw, (actions_n, input_size), jnp.float32, minval=-bound, maxval=bound
    )
    bias = jax.random.uniform(
        kb, (actions_n,), jnp.float32, minval=-bound, maxval=bound
    )
    x = jax.random.normal(kx, (batch, input_size), jnp.float32)

    # One-time parameter layout (hoisted out of the per-call path).
    wt_f32, b2 = prepare_policy_net_params(weight, bias, compute_dtype=jnp.float32)

    # --- small batch, force the Pallas path (min_pallas_batch=0) ------------
    y = policy_net_forward(x, wt_f32, b2, min_pallas_batch=0)
    jax.block_until_ready(y)
    y_ref = x @ weight.T + bias
    assert y.shape == (batch, actions_n)
    assert jnp.allclose(y, y_ref, atol=1e-5, rtol=1e-5)

    # --- small batch, default bypass path (plain XLA) ------------------------
    y_bypass = policy_net_forward(x, wt_f32, b2)  # B=4 < 256 -> XLA path
    jax.block_until_ready(y_bypass)
    assert jnp.allclose(y_bypass, y_ref, atol=1e-5, rtol=1e-5)

    # --- bigger batches: ragged single tile and multi-tile + ragged tail -----
    big_B = 1030
    xb = jax.random.normal(jax.random.PRNGKey(1), (big_B, input_size), jnp.float32)
    yb = policy_net_forward(xb, wt_f32, b2, tb=4096)
    jax.block_until_ready(yb)
    yb_ref = xb @ weight.T + bias
    assert yb.shape == (big_B, actions_n)
    assert jnp.allclose(yb, yb_ref, atol=1e-5, rtol=1e-5)

    huge_B = 9001  # grid of 3 tiles at tb=4096, ragged tail
    xh = jax.random.normal(jax.random.PRNGKey(2), (huge_B, input_size), jnp.float32)
    yh = policy_net_forward(xh, wt_f32, b2, tb=4096)
    jax.block_until_ready(yh)
    yh_ref = xh @ weight.T + bias
    assert yh.shape == (huge_B, actions_n)
    assert jnp.allclose(yh, yh_ref, atol=1e-5, rtol=1e-5)

    # --- bf16 streaming path (halves HBM read traffic on v6e/v7x) ------------
    wt_bf16, b2_bf16 = prepare_policy_net_params(
        weight, bias, compute_dtype=jnp.bfloat16
    )
    yb16 = policy_net_forward(xb, wt_bf16, b2_bf16, tb=4096)
    jax.block_until_ready(yb16)
    assert yb16.shape == (big_B, actions_n)
    assert jnp.allclose(yb16, yb_ref, atol=3e-2, rtol=3e-2)

    print("KERNEL_OK")
</pallas_src>

<mosaic_0001>
module attributes {stable_mosaic.version = 11 : i64} {
  func.func @_linear_kernel(%arg0: i32, %arg1: memref<8x32xf32, #tpu.memory_space<vmem>>, %arg2: memref<32x8xf32, #tpu.memory_space<vmem>>, %arg3: memref<1x8xf32, #tpu.memory_space<vmem>>, %arg4: memref<8x8xf32, #tpu.memory_space<vmem>>) attributes {dimension_semantics = [#tpu.dimension_semantics<parallel>], iteration_bounds = array<i64: 1>, scalar_prefetch = 0 : i64, scratch_operands = 0 : i64, tpu.core_type = #tpu.core_type<tc>, window_params = [{transform_indices = @transform_0, window_bounds = array<i64: 8, 32>}, {pipeline_mode = #tpu.pipeline_mode<synchronous>, transform_indices = @transform_1, window_bounds = array<i64: 32, 8>}, {pipeline_mode = #tpu.pipeline_mode<synchronous>, transform_indices = @transform_2, window_bounds = array<i64: 1, 8>}, {transform_indices = @transform_3, window_bounds = array<i64: 8, 8>}]} {
    %c0 = arith.constant 0 : index
    %c0_0 = arith.constant 0 : index
    %0 = vector.load %arg1[%c0, %c0_0] : memref<8x32xf32, #tpu.memory_space<vmem>>, vector<8x32xf32>
    %c0_1 = arith.constant 0 : index
    %c0_2 = arith.constant 0 : index
    %1 = vector.load %arg2[%c0_1, %c0_2] : memref<32x8xf32, #tpu.memory_space<vmem>>, vector<32x8xf32>
    %cst = arith.constant dense<0.000000e+00> : vector<8x8xf32>
    %2 = tpu.matmul %0, %1, %cst {dimension_numbers = #tpu.dot_dimension_numbers<[1], [0], [0], [1], [0, 0, 1, 1], [], []>} : vector<8x32xf32>, vector<32x8xf32>, vector<8x8xf32> -> vector<8x8xf32>
    %c0_3 = arith.constant 0 : index
    %c0_4 = arith.constant 0 : index
    %3 = vector.load %arg3[%c0_3, %c0_4] : memref<1x8xf32, #tpu.memory_space<vmem>>, vector<1x8xf32>
    %4 = vector.broadcast %3 : vector<1x8xf32> to vector<8x8xf32>
    %5 = arith.addf %2, %4 : vector<8x8xf32>
    %c0_5 = arith.constant 0 : index
    %c0_6 = arith.constant 0 : index
    %6 = vector.load %arg4[%c0_5, %c0_6] : memref<8x8xf32, #tpu.memory_space<vmem>>, vector<8x8xf32>
    tpu.vector_store %arg4[%c0_5, %c0_6], %5 {strides = array<i32>} : memref<8x8xf32, #tpu.memory_space<vmem>>, vector<8x8xf32>,
    return
  }
  func.func @transform_0(%arg0: i32) -> (i32, i32) {
    %c0_i32 = arith.constant 0 : i32
    %c0_i32_0 = arith.constant 0 : i32
    return %arg0, %c0_i32 : i32, i32
  }
  func.func @transform_1(%arg0: i32) -> (i32, i32) {
    %c0_i32 = arith.constant 0 : i32
    %c0_i32_0 = arith.constant 0 : i32
    %c0_i32_1 = arith.constant 0 : i32
    return %c0_i32, %c0_i32_0 : i32, i32
  }
  func.func @transform_2(%arg0: i32) -> (i32, i32) {
    %c0_i32 = arith.constant 0 : i32
    %c0_i32_0 = arith.constant 0 : i32
    %c0_i32_1 = arith.constant 0 : i32
    return %c0_i32, %c0_i32_0 : i32, i32
  }
  func.func @transform_3(%arg0: i32) -> (i32, i32) {
    %c0_i32 = arith.constant 0 : i32
    %c0_i32_0 = arith.constant 0 : i32
    return %arg0, %c0_i32 : i32, i32
  }
}

</mosaic_0001>

<bundles_post_ra>
// kernel: tpu_custom_call.1
= control target key start
LH: loop header
LB: loop body
LE: loop exit
PB: predicated region body
PF: predicated region fallthrough
CT: control target
= control target key end

     0   :  { %8 = vsyncpa [#allocation3], 0  ;;  %v173_v2 = vmov 0.0|0.0   ;;  %vm174_vm0 = vmmov 0   ;;  %v175_v6 = vmov 0.0   ;;  %vm27_vm1 = vcmask 261120   ;;  %s229_s0 = inlined_call_operand.vmem [shape: f32[4,32], index: 0, kind: input, shape index: {}]   ;;  %s230_s1 = inlined_call_operand.vmem [shape: f32[32,8], index: 1, kind: input, shape index: {}]   ;;  %s231_s2 = inlined_call_operand.vmem [shape: f32[1,8], index: 2, kind: input, shape index: {}]   ;;  %s232_s3 = inlined_call_operand.hbm [shape: f32[4,8], index: 3, kind: output, shape index: {}]  }
   0x1   :  { %v16_v0 = vld [vmem:[%s230_s1] sm:$0xff]  ;;  %v17_v1 = vld [vmem:[%s230_s1 + $0x8] sm:$0xff]  ;;  %137 = vmatprep.subr.bf16.mxu0 %v173_v2  ;;  %v18_v4 = vld [vmem:[%s230_s1 + $0x10] sm:$0xff]  ;;  %134 = vmatprep.mubr.msk.f32.mxu0 %vm174_vm0, %v175_v6  ;;  %vm101_vm2 = vcmask 64512  }
   0x2   :  { %v138_v3 = vpack.c.bf16 %v17_v1, %v16_v0  ;;  %v19_v5 = vld [vmem:[%s230_s1 + $0x18] sm:$0xff]  ;;  %v15_v8 = vld [vmem:[%s229_s0] sm:$0xff] }
   0x3   :  { %v141_v7 = vpack.c.bf16 %v19_v5, %v18_v4  ;;  %v119_v9 = vld [vmem:[%s231_s2] ss:$0 sm:$0xff] }
   0x4   :  { %139 = vmatpush3.bf16.msra.mxu0 %v138_v3 }
   0x5   :  { %140 = vmatprep.subr.bf16.mxu0 %v173_v2 }
   0x8   :  { %142 = vmatpush3.bf16.msra.mxu0 %v141_v7 }
   0xb   :  { %135 = vmatmul.mubr.msk.f32.vlgmr.msra.gmra.mrb[0].mxu0 %vm27_vm1, %v15_v8 }
  0xde   :  { %v97_v10 = vpop.f32.mrb[0].mxu0 }
  0xdf   :  { %v98_v11 = vadd.f32 %v119_v9, %v97_v10  ;;  %v136_v12 = vpop.f32.mrb[1].mxu0 }
  0xe1   :  { %102 = vst.msk [vmem:[#allocation2] sm:$0xff] %vm101_vm2, %v98_v11 }
  0xe2   :  { %107 = vsyncadd [#allocation3], 64  ;;  %s176_s1 = smov [#allocation2]  }
  0xe3   :  { %s108_s24 = sshll.u32 %s176_s1, 4  ;;  %s109_s24 = int_to_ptr.vmem [resolvable:$true] %s108_s24 }
  0xe4   :  { %s149_s25 = scalar_lea.vmem %s109_s24, 64  ;;  %s153_s26 = scalar_lea.vmem %s109_s24, 128 }
  0xe5   :  { %p150_p0 = scmp.ne.s32.totalorder %s109_s24, %s149_s25  ;;  %p154_p1 = scmp.lt.s32.totalorder %s109_s24, %s109_s24 }
  0xe6   :  { %p155_p2 = scmp.lt.s32.totalorder %s153_s26, %s149_s25 }
  0xe8   :  { %p156_p3 = por %p155_p2, %p154_p1 }
  0xea   :  { %p157_p4 = pnand %p156_p3, %p150_p0 }
  0xec   :  { %160 = shalt.err (!%p157_p4)
}
  0xed   :  { %s161_s2 = scalar_lea.hbm %s232_s3, 64 }
  0xee   :  { %p162_p5 = scmp.ne.s32.totalorder %s232_s3, %s161_s2  ;;  %p165_p6 = scmp.lt.u32.totalorder %s161_s2, %s232_s3 }
  0xf0   :  { %p167_p7 = pnand %p165_p6, %p162_p5 }
  0xf2   :  { %170 = shalt.err (!%p167_p7)
}
  0xf3   :  { %s177_s5 = smov 64   ;;  %s178_s6 = smov 4  }
  0xf4   :  { %114 = dma.vmem_to_hbm [thread:$0]  %s109_s24, 64, %s232_s3, [#allocation3], %s177_s5, %s177_s5, %s178_s6  }
  0xf5   :  { %171 = dma.done.wait [#allocation3], 128  }
  0xf6   :  { %172 = vsyncadd [#allocation3], 4294967168 }
  0xf7   :  { %118 = vsyncpa [#allocation3], 1 }

</bundles_post_ra>
